<compile_context>
chip_gen: v6e
topology: v6e:2x2x1
jax: 0.10.0
libtpu: 0.0.40
codegen_flags: <defaults>
</compile_context>

<pallas_src>
import functools

import jax
import jax.numpy as jnp
from jax import lax
from jax.experimental import pallas as pl
from jax.experimental.pallas import tpu as pltpu

EP = 1e-6
ALPHA = 0.3
LOG_CLAMP = -100.0   # nn.BCELoss clamps log terms at -100
LANE = 128
SUB = 8


def _multi_loss_kernel(*args, num_preds, total_n, tile_rows, steps_per_chunk,
                       mask_needed, binary_labels):
    K = num_preds
    pred_refs = args[:K]
    label_ref = args[K]
    out_ref = args[K + 1]          # (1, 3K+1, 8, 128) per-chunk partial sums

    c = pl.program_id(0)           # chunk (parallel; sharded across TCs on v7x)
    j = pl.program_id(1)           # step within chunk (reduction)

    @pl.when(j == 0)
    def _():
        out_ref[...] = jnp.zeros_like(out_ref)

    l = label_ref[...].astype(jnp.float32)               # (tile_rows, 128)
    if mask_needed:
        # Zero out anything past the true element count (covers ragged tail and
        # undefined data in Pallas edge / clamped-duplicate blocks).
        tile_idx = c * steps_per_chunk + j                # logical (unclamped) tile
        row0 = tile_idx * tile_rows
        rid = lax.broadcasted_iota(jnp.int32, (tile_rows, LANE), 0)
        lid = lax.broadcasted_iota(jnp.int32, (tile_rows, LANE), 1)
        valid = (row0 + rid) * LANE + lid < total_n
        l = jnp.where(valid, l, 0.0)
    one_m_l = 1.0 - l

    # Shared sum(label) partials (slot 3K).  VPU-only adds into vreg-shaped tiles.
    out_ref[0, 3 * K] += l.reshape(-1, SUB, LANE).sum(axis=0)

    for k in range(K):                                    # K is small & static
        p = pred_refs[k][...].astype(jnp.float32)
        if mask_needed:
            p = jnp.where(valid, p, 0.0)
        if binary_labels:
            # Single-log BCE (exact only for l in {0,1}); halves EUP work.
            z = jnp.where(l > 0.5, p, 1.0 - p)
            bce_neg = jnp.maximum(jnp.log(z), LOG_CLAMP)
        else:
            # PyTorch-style: clamp each log term at -100 BEFORE multiplying,
            # so l==0 / l==1 never meets an inf.
            log_p = jnp.maximum(jnp.log(p), LOG_CLAMP)
            log_1mp = jnp.maximum(jnp.log(1.0 - p), LOG_CLAMP)
            bce_neg = l * log_p + one_m_l * log_1mp       # negation deferred to wrapper
        out_ref[0, k] += bce_neg.reshape(-1, SUB, LANE).sum(axis=0)        # BCE sum (negated later)
        out_ref[0, K + k] += (p * l).reshape(-1, SUB, LANE).sum(axis=0)    # sum(p*l)
        out_ref[0, 2 * K + k] += p.reshape(-1, SUB, LANE).sum(axis=0)      # sum(p)


def multi_loss(predict_list, prediction, label, *, ep=EP, alpha=ALPHA,
               binary_labels=False):
    """predict_list: list of prob tensors; prediction: prob tensor; label in [0,1].
    All tensors share `label`'s shape. Returns the scalar MultiLoss."""
    preds = list(predict_list) + [prediction]
    num_ig = len(predict_list)
    K = len(preds)
    total_n = label.size
    rows = -(-total_n // LANE)

    # Lane-dense (rows, 128) views, NATIVE dtype (no f32 cast, no stack).
    def as_rows(x):
        x = jnp.reshape(x, (-1,))
        if rows * LANE != total_n:
            x = jnp.pad(x, (0, rows * LANE - total_n))    # rare ragged fallback
        return jnp.reshape(x, (rows, LANE))

    preds2d = [as_rows(p) for p in preds]
    lab2d = as_rows(label)

    # Tile sizing: ~16 MiB double-buffered input budget (safe per-TC on v7x's
    # 64 MiB VMEM; well inside v5e/v6e), capped at 2048 rows (~1 MiB f32/tensor).
    budget_bytes = 16 * 1024 * 1024
    cap = max(SUB, (budget_bytes // (2 * (K + 1) * LANE * 4)) // SUB * SUB)
    rows8 = -(-rows // SUB) * SUB
    tile_rows = min(2048, cap, rows8)

    num_tiles = -(-rows // tile_rows)
    num_chunks = 2 if num_tiles >= 2 else 1               # v7x: one chunk per TC
    steps_per_chunk = -(-num_tiles // num_chunks)
    logical_tiles = num_chunks * steps_per_chunk
    mask_needed = logical_tiles * tile_rows * LANE > total_n

    if logical_tiles > num_tiles:
        # Odd tile count: clamp the (at most one) overhanging step onto the last
        # valid tile; the in-kernel mask zeroes its entire contribution.
        def row_map(c, j):
            return (jnp.minimum(c * steps_per_chunk + j, num_tiles - 1), 0)
    else:
        def row_map(c, j):
            return (c * steps_per_chunk + j, 0)

    kernel = functools.partial(
        _multi_loss_kernel,
        num_preds=K, total_n=total_n, tile_rows=tile_rows,
        steps_per_chunk=steps_per_chunk, mask_needed=mask_needed,
        binary_labels=binary_labels)

    n_slots = 3 * K + 1
    partials = pl.pallas_call(
        kernel,
        out_shape=jax.ShapeDtypeStruct((num_chunks, n_slots, SUB, LANE), jnp.float32),
        grid_spec=pltpu.PrefetchScalarGridSpec(
            num_scalar_prefetch=0,
            grid=(num_chunks, steps_per_chunk),
            in_specs=[pl.BlockSpec((tile_rows, LANE), row_map)
                      for _ in range(K + 1)],
            out_specs=pl.BlockSpec((1, n_slots, SUB, LANE),
                                   lambda c, j: (c, 0, 0, 0)),
        ),
        compiler_params=pltpu.CompilerParams(
            dimension_semantics=("parallel", "arbitrary"),
            vmem_limit_bytes=32 * 1024 * 1024,
        ),
    )(*preds2d, lab2d)

    # Tiny final combine: 3K+1 scalars per chunk.
    sums = jnp.sum(partials, axis=(0, 2, 3))              # (3K+1,)
    n = jnp.float32(total_n)
    lsum = sums[3 * K]
    ig = jnp.float32(0.0)
    pi = jnp.float32(0.0)
    for k in range(K):
        bce_mean = -sums[k] / n                           # deferred negation and 1/n
        dice = 1.0 - (2.0 * sums[K + k] + ep) / (sums[2 * K + k] + lsum + ep)
        if k < num_ig:
            ig = ig + (1.0 / (num_ig - k)) * (bce_mean + 0.1 * dice)
        else:
            pi = bce_mean + 0.5 * dice
    return alpha * ig + (1.0 - alpha) * pi


# ----------------------------- pure-JAX reference -----------------------------

def _bce_mean_ref(p, l):
    log_p = jnp.maximum(jnp.log(p), LOG_CLAMP)
    log_1mp = jnp.maximum(jnp.log(1.0 - p), LOG_CLAMP)
    return jnp.mean(-(l * log_p + (1.0 - l) * log_1mp))


def _dice_ref(p, l, ep):
    inter = 2.0 * jnp.sum(p * l) + ep
    union = jnp.sum(p) + jnp.sum(l) + ep
    return 1.0 - inter / union


def _multi_loss_ref(predict_list, prediction, label, ep=EP, alpha=ALPHA):
    p32 = [p.astype(jnp.float32) for p in predict_list]
    pred = prediction.astype(jnp.float32)
    lab = label.astype(jnp.float32)
    n = len(p32)
    ig = 0.0
    for idx, p in enumerate(p32):
        ig = ig + (1.0 / (n - idx)) * (_bce_mean_ref(p, lab) + 0.1 * _dice_ref(p, lab, ep))
    pi = _bce_mean_ref(pred, lab) + 0.5 * _dice_ref(pred, lab, ep)
    return alpha * ig + (1.0 - alpha) * pi


if __name__ == "__main__":
    key = jax.random.PRNGKey(0)
    keys = jax.random.split(key, 5)

    B, C, H, W = 2, 4, 16, 16  # NCHW, 2048 elements per tensor
    # BCELoss expects post-sigmoid probabilities in (0, 1)
    predict_list = [
        jax.nn.sigmoid(jax.random.normal(keys[i], (B, C, H, W), dtype=jnp.float32))
        for i in range(3)
    ]
    prediction = jax.nn.sigmoid(
        jax.random.normal(keys[3], (B, C, H, W), dtype=jnp.float32))
    label = jax.random.bernoulli(keys[4], p=0.5, shape=(B, C, H, W)).astype(jnp.float32)

    loss = jax.block_until_ready(multi_loss(predict_list, prediction, label))

    ref = _multi_loss_ref(predict_list, prediction, label)
    assert jnp.allclose(loss, ref, rtol=1e-5, atol=1e-6), (loss, ref)

    print("KERNEL_OK")
</pallas_src>

<mosaic_0001>
module attributes {stable_mosaic.version = 11 : i64} {
  func.func @_multi_loss_kernel(%arg0: i32, %arg1: i32, %arg2: memref<16x128xf32, #tpu.memory_space<vmem>>, %arg3: memref<16x128xf32, #tpu.memory_space<vmem>>, %arg4: memref<16x128xf32, #tpu.memory_space<vmem>>, %arg5: memref<16x128xf32, #tpu.memory_space<vmem>>, %arg6: memref<16x128xf32, #tpu.memory_space<vmem>>, %arg7: memref<1x13x8x128xf32, #tpu.memory_space<vmem>>) attributes {dimension_semantics = [#tpu.dimension_semantics<parallel>, #tpu.dimension_semantics<arbitrary>], iteration_bounds = array<i64: 1, 1>, scalar_prefetch = 0 : i64, scratch_operands = 0 : i64, tpu.core_type = #tpu.core_type<tc>, window_params = [{transform_indices = @transform_0, window_bounds = array<i64: 16, 128>}, {transform_indices = @transform_1, window_bounds = array<i64: 16, 128>}, {transform_indices = @transform_2, window_bounds = array<i64: 16, 128>}, {transform_indices = @transform_3, window_bounds = array<i64: 16, 128>}, {transform_indices = @transform_4, window_bounds = array<i64: 16, 128>}, {transform_indices = @transform_5, window_bounds = array<i64: 1, 13, 8, 128>}]} {
    %c0_i32 = arith.constant 0 : i32
    %0 = arith.cmpi eq, %arg1, %c0_i32 : i32
    %1 = arith.extui %0 : i1 to i32
    %c0_i32_0 = arith.constant 0 : i32
    %2 = arith.cmpi ne, %1, %c0_i32_0 : i32
    scf.if %2 {
      %cst_127 = arith.constant 0.000000e+00 : f32
      %162 = vector.broadcast %cst_127 : f32 to vector<1x13x8x128xf32>
      %c0_128 = arith.constant 0 : index
      %c0_129 = arith.constant 0 : index
      %c0_130 = arith.constant 0 : index
      %c0_131 = arith.constant 0 : index
      %163 = vector.load %arg7[%c0_128, %c0_129, %c0_130, %c0_131] : memref<1x13x8x128xf32, #tpu.memory_space<vmem>>, vector<1x13x8x128xf32>
      tpu.vector_store %arg7[%c0_128, %c0_129, %c0_130, %c0_131], %162 {strides = array<i32>} : memref<1x13x8x128xf32, #tpu.memory_space<vmem>>, vector<1x13x8x128xf32>,
    } else {
    }
    %c0 = arith.constant 0 : index
    %c0_1 = arith.constant 0 : index
    %3 = vector.load %arg6[%c0, %c0_1] : memref<16x128xf32, #tpu.memory_space<vmem>>, vector<16x128xf32>
    %cst = arith.constant 1.000000e+00 : f32
    %4 = vector.broadcast %cst : f32 to vector<16x128xf32>
    %5 = arith.subf %4, %3 : vector<16x128xf32>
    %c0_2 = arith.constant 0 : index
    %c12 = arith.constant 12 : index
    %c0_3 = arith.constant 0 : index
    %c0_4 = arith.constant 0 : index
    %6 = vector.load %arg7[%c0_2, %c12, %c0_3, %c0_4] : memref<1x13x8x128xf32, #tpu.memory_space<vmem>>, vector<1x1x8x128xf32>
    %7 = vector.shape_cast %6 : vector<1x1x8x128xf32> to vector<8x128xf32>
    %8 = vector.shape_cast %3 : vector<16x128xf32> to vector<2x8x128xf32>
    %cst_5 = arith.constant dense<0.000000e+00> : vector<8x128xf32>
    %9 = vector.multi_reduction <add>, %8, %cst_5 [0] : vector<2x8x128xf32> to vector<8x128xf32>
    %10 = arith.addf %7, %9 : vector<8x128xf32>
    %c0_6 = arith.constant 0 : index
    %c12_7 = arith.constant 12 : index
    %c0_8 = arith.constant 0 : index
    %c0_9 = arith.constant 0 : index
    %11 = vector.load %arg7[%c0_6, %c12_7, %c0_8, %c0_9] : memref<1x13x8x128xf32, #tpu.memory_space<vmem>>, vector<1x1x8x128xf32>
    %12 = vector.shape_cast %11 : vector<1x1x8x128xf32> to vector<8x128xf32>
    %13 = vector.shape_cast %10 : vector<8x128xf32> to vector<1x1x8x128xf32>
    tpu.vector_store %arg7[%c0_6, %c12_7, %c0_8, %c0_9], %13 {strides = array<i32>} : memref<1x13x8x128xf32, #tpu.memory_space<vmem>>, vector<1x1x8x128xf32>,
    %c0_10 = arith.constant 0 : index
    %c0_11 = arith.constant 0 : index
    %14 = vector.load %arg2[%c0_10, %c0_11] : memref<16x128xf32, #tpu.memory_space<vmem>>, vector<16x128xf32>
    %15 = math.log %14 : vector<16x128xf32>
    %cst_12 = arith.constant -1.000000e+02 : f32
    %16 = vector.broadcast %cst_12 : f32 to vector<16x128xf32>
    %17 = arith.maximumf %15, %16 : vector<16x128xf32>
    %cst_13 = arith.constant 1.000000e+00 : f32
    %18 = vector.broadcast %cst_13 : f32 to vector<16x128xf32>
    %19 = arith.subf %18, %14 : vector<16x128xf32>
    %20 = math.log %19 : vector<16x128xf32>
    %cst_14 = arith.constant -1.000000e+02 : f32
    %21 = vector.broadcast %cst_14 : f32 to vector<16x128xf32>
    %22 = arith.maximumf %20, %21 : vector<16x128xf32>
    %23 = arith.mulf %3, %17 : vector<16x128xf32>
    %24 = arith.mulf %5, %22 : vector<16x128xf32>
    %25 = arith.addf %23, %24 : vector<16x128xf32>
    %c0_15 = arith.constant 0 : index
    %c0_16 = arith.constant 0 : index
    %c0_17 = arith.constant 0 : index
    %c0_18 = arith.constant 0 : index
    %26 = vector.load %arg7[%c0_15, %c0_16, %c0_17, %c0_18] : memref<1x13x8x128xf32, #tpu.memory_space<vmem>>, vector<1x1x8x128xf32>
    %27 = vector.shape_cast %26 : vector<1x1x8x128xf32> to vector<8x128xf32>
    %28 = vector.shape_cast %25 : vector<16x128xf32> to vector<2x8x128xf32>
    %cst_19 = arith.constant dense<0.000000e+00> : vector<8x128xf32>
    %29 = vector.multi_reduction <add>, %28, %cst_19 [0] : vector<2x8x128xf32> to vector<8x128xf32>
    %30 = arith.addf %27, %29 : vector<8x128xf32>
    %c0_20 = arith.constant 0 : index
    %c0_21 = arith.constant 0 : index
    %c0_22 = arith.constant 0 : index
    %c0_23 = arith.constant 0 : index
    %31 = vector.load %arg7[%c0_20, %c0_21, %c0_22, %c0_23] : memref<1x13x8x128xf32, #tpu.memory_space<vmem>>, vector<1x1x8x128xf32>
    %32 = vector.shape_cast %31 : vector<1x1x8x128xf32> to vector<8x128xf32>
    %33 = vector.shape_cast %30 : vector<8x128xf32> to vector<1x1x8x128xf32>
    tpu.vector_store %arg7[%c0_20, %c0_21, %c0_22, %c0_23], %33 {strides = array<i32>} : memref<1x13x8x128xf32, #tpu.memory_space<vmem>>, vector<1x1x8x128xf32>,
    %c0_24 = arith.constant 0 : index
    %c4 = arith.constant 4 : index
    %c0_25 = arith.constant 0 : index
    %c0_26 = arith.constant 0 : index
    %34 = vector.load %arg7[%c0_24, %c4, %c0_25, %c0_26] : memref<1x13x8x128xf32, #tpu.memory_space<vmem>>, vector<1x1x8x128xf32>
    %35 = vector.shape_cast %34 : vector<1x1x8x128xf32> to vector<8x128xf32>
    %36 = arith.mulf %14, %3 : vector<16x128xf32>
    %37 = vector.shape_cast %36 : vector<16x128xf32> to vector<2x8x128xf32>
    %cst_27 = arith.constant dense<0.000000e+00> : vector<8x128xf32>
    %38 = vector.multi_reduction <add>, %37, %cst_27 [0] : vector<2x8x128xf32> to vector<8x128xf32>
    %39 = arith.addf %35, %38 : vector<8x128xf32>
    %c0_28 = arith.constant 0 : index
    %c4_29 = arith.constant 4 : index
    %c0_30 = arith.constant 0 : index
    %c0_31 = arith.constant 0 : index
    %40 = vector.load %arg7[%c0_28, %c4_29, %c0_30, %c0_31] : memref<1x13x8x128xf32, #tpu.memory_space<vmem>>, vector<1x1x8x128xf32>
    %41 = vector.shape_cast %40 : vector<1x1x8x128xf32> to vector<8x128xf32>
    %42 = vector.shape_cast %39 : vector<8x128xf32> to vector<1x1x8x128xf32>
    tpu.vector_store %arg7[%c0_28, %c4_29, %c0_30, %c0_31], %42 {strides = array<i32>} : memref<1x13x8x128xf32, #tpu.memory_space<vmem>>, vector<1x1x8x128xf32>,
    %c0_32 = arith.constant 0 : index
    %c8 = arith.constant 8 : index
    %c0_33 = arith.constant 0 : index
    %c0_34 = arith.constant 0 : index
    %43 = vector.load %arg7[%c0_32, %c8, %c0_33, %c0_34] : memref<1x13x8x128xf32, #tpu.memory_space<vmem>>, vector<1x1x8x128xf32>
    %44 = vector.shape_cast %43 : vector<1x1x8x128xf32> to vector<8x128xf32>
    %45 = vector.shape_cast %14 : vector<16x128xf32> to vector<2x8x128xf32>
    %cst_35 = arith.constant dense<0.000000e+00> : vector<8x128xf32>
    %46 = vector.multi_reduction <add>, %45, %cst_35 [0] : vector<2x8x128xf32> to vector<8x128xf32>
    %47 = arith.addf %44, %46 : vector<8x128xf32>
    %c0_36 = arith.constant 0 : index
    %c8_37 = arith.constant 8 : index
    %c0_38 = arith.constant 0 : index
    %c0_39 = arith.constant 0 : index
    %48 = vector.load %arg7[%c0_36, %c8_37, %c0_38, %c0_39] : memref<1x13x8x128xf32, #tpu.memory_space<vmem>>, vector<1x1x8x128xf32>
    %49 = vector.shape_cast %48 : vector<1x1x8x128xf32> to vector<8x128xf32>
    %50 = vector.shape_cast %47 : vector<8x128xf32> to vector<1x1x8x128xf32>
    tpu.vector_store %arg7[%c0_36, %c8_37, %c0_38, %c0_39], %50 {strides = array<i32>} : memref<1x13x8x128xf32, #tpu.memory_space<vmem>>, vector<1x1x8x128xf32>,
    %c0_40 = arith.constant 0 : index
    %c0_41 = arith.constant 0 : index
    %51 = vector.load %arg3[%c0_40, %c0_41] : memref<16x128xf32, #tpu.memory_space<vmem>>, vector<16x128xf32>
    %52 = math.log %51 : vector<16x128xf32>
    %cst_42 = arith.constant -1.000000e+02 : f32
    %53 = vector.broadcast %cst_42 : f32 to vector<16x128xf32>
    %54 = arith.maximumf %52, %53 : vector<16x128xf32>
    %cst_43 = arith.constant 1.000000e+00 : f32
    %55 = vector.broadcast %cst_43 : f32 to vector<16x128xf32>
    %56 = arith.subf %55, %51 : vector<16x128xf32>
    %57 = math.log %56 : vector<16x128xf32>
    %cst_44 = arith.constant -1.000000e+02 : f32
    %58 = vector.broadcast %cst_44 : f32 to vector<16x128xf32>
    %59 = arith.maximumf %57, %58 : vector<16x128xf32>
    %60 = arith.mulf %3, %54 : vector<16x128xf32>
    %61 = arith.mulf %5, %59 : vector<16x128xf32>
    %62 = arith.addf %60, %61 : vector<16x128xf32>
    %c0_45 = arith.constant 0 : index
    %c1 = arith.constant 1 : index
    %c0_46 = arith.constant 0 : index
    %c0_47 = arith.constant 0 : index
    %63 = vector.load %arg7[%c0_45, %c1, %c0_46, %c0_47] : memref<1x13x8x128xf32, #tpu.memory_space<vmem>>, vector<1x1x8x128xf32>
    %64 = vector.shape_cast %63 : vector<1x1x8x128xf32> to vector<8x128xf32>
    %65 = vector.shape_cast %62 : vector<16x128xf32> to vector<2x8x128xf32>
    %cst_48 = arith.constant dense<0.000000e+00> : vector<8x128xf32>
    %66 = vector.multi_reduction <add>, %65, %cst_48 [0] : vector<2x8x128xf32> to vector<8x128xf32>
    %67 = arith.addf %64, %66 : vector<8x128xf32>
    %c0_49 = arith.constant 0 : index
    %c1_50 = arith.constant 1 : index
    %c0_51 = arith.constant 0 : index
    %c0_52 = arith.constant 0 : index
    %68 = vector.load %arg7[%c0_49, %c1_50, %c0_51, %c0_52] : memref<1x13x8x128xf32, #tpu.memory_space<vmem>>, vector<1x1x8x128xf32>
    %69 = vector.shape_cast %68 : vector<1x1x8x128xf32> to vector<8x128xf32>
    %70 = vector.shape_cast %67 : vector<8x128xf32> to vector<1x1x8x128xf32>
    tpu.vector_store %arg7[%c0_49, %c1_50, %c0_51, %c0_52], %70 {strides = array<i32>} : memref<1x13x8x128xf32, #tpu.memory_space<vmem>>, vector<1x1x8x128xf32>,
    %c0_53 = arith.constant 0 : index
    %c5 = arith.constant 5 : index
    %c0_54 = arith.constant 0 : index
    %c0_55 = arith.constant 0 : index
    %71 = vector.load %arg7[%c0_53, %c5, %c0_54, %c0_55] : memref<1x13x8x128xf32, #tpu.memory_space<vmem>>, vector<1x1x8x128xf32>
    %72 = vector.shape_cast %71 : vector<1x1x8x128xf32> to vector<8x128xf32>
    %73 = arith.mulf %51, %3 : vector<16x128xf32>
    %74 = vector.shape_cast %73 : vector<16x128xf32> to vector<2x8x128xf32>
    %cst_56 = arith.constant dense<0.000000e+00> : vector<8x128xf32>
    %75 = vector.multi_reduction <add>, %74, %cst_56 [0] : vector<2x8x128xf32> to vector<8x128xf32>
    %76 = arith.addf %72, %75 : vector<8x128xf32>
    %c0_57 = arith.constant 0 : index
    %c5_58 = arith.constant 5 : index
    %c0_59 = arith.constant 0 : index
    %c0_60 = arith.constant 0 : index
    %77 = vector.load %arg7[%c0_57, %c5_58, %c0_59, %c0_60] : memref<1x13x8x128xf32, #tpu.memory_space<vmem>>, vector<1x1x8x128xf32>
    %78 = vector.shape_cast %77 : vector<1x1x8x128xf32> to vector<8x128xf32>
    %79 = vector.shape_cast %76 : vector<8x128xf32> to vector<1x1x8x128xf32>
    tpu.vector_store %arg7[%c0_57, %c5_58, %c0_59, %c0_60], %79 {strides = array<i32>} : memref<1x13x8x128xf32, #tpu.memory_space<vmem>>, vector<1x1x8x128xf32>,
    %c0_61 = arith.constant 0 : index
    %c9 = arith.constant 9 : index
    %c0_62 = arith.constant 0 : index
    %c0_63 = arith.constant 0 : index
    %80 = vector.load %arg7[%c0_61, %c9, %c0_62, %c0_63] : memref<1x13x8x128xf32, #tpu.memory_space<vmem>>, vector<1x1x8x128xf32>
    %81 = vector.shape_cast %80 : vector<1x1x8x128xf32> to vector<8x128xf32>
    %82 = vector.shape_cast %51 : vector<16x128xf32> to vector<2x8x128xf32>
    %cst_64 = arith.constant dense<0.000000e+00> : vector<8x128xf32>
    %83 = vector.multi_reduction <add>, %82, %cst_64 [0] : vector<2x8x128xf32> to vector<8x128xf32>
    %84 = arith.addf %81, %83 : vector<8x128xf32>
    %c0_65 = arith.constant 0 : index
    %c9_66 = arith.constant 9 : index
    %c0_67 = arith.constant 0 : index
    %c0_68 = arith.constant 0 : index
    %85 = vector.load %arg7[%c0_65, %c9_66, %c0_67, %c0_68] : memref<1x13x8x128xf32, #tpu.memory_space<vmem>>, vector<1x1x8x128xf32>
    %86 = vector.shape_cast %85 : vector<1x1x8x128xf32> to vector<8x128xf32>
    %87 = vector.shape_cast %84 : vector<8x128xf32> to vector<1x1x8x128xf32>
    tpu.vector_store %arg7[%c0_65, %c9_66, %c0_67, %c0_68], %87 {strides = array<i32>} : memref<1x13x8x128xf32, #tpu.memory_space<vmem>>, vector<1x1x8x128xf32>,
    %c0_69 = arith.constant 0 : index
    %c0_70 = arith.constant 0 : index
    %88 = vector.load %arg4[%c0_69, %c0_70] : memref<16x128xf32, #tpu.memory_space<vmem>>, vector<16x128xf32>
    %89 = math.log %88 : vector<16x128xf32>
    %cst_71 = arith.constant -1.000000e+02 : f32
    %90 = vector.broadcast %cst_71 : f32 to vector<16x128xf32>
    %91 = arith.maximumf %89, %90 : vector<16x128xf32>
    %cst_72 = arith.constant 1.000000e+00 : f32
    %92 = vector.broadcast %cst_72 : f32 to vector<16x128xf32>
    %93 = arith.subf %92, %88 : vector<16x128xf32>
    %94 = math.log %93 : vector<16x128xf32>
    %cst_73 = arith.constant -1.000000e+02 : f32
    %95 = vector.broadcast %cst_73 : f32 to vector<16x128xf32>
    %96 = arith.maximumf %94, %95 : vector<16x128xf32>
    %97 = arith.mulf %3, %91 : vector<16x128xf32>
    %98 = arith.mulf %5, %96 : vector<16x128xf32>
    %99 = arith.addf %97, %98 : vector<16x128xf32>
    %c0_74 = arith.constant 0 : index
    %c2 = arith.constant 2 : index
    %c0_75 = arith.constant 0 : index
    %c0_76 = arith.constant 0 : index
    %100 = vector.load %arg7[%c0_74, %c2, %c0_75, %c0_76] : memref<1x13x8x128xf32, #tpu.memory_space<vmem>>, vector<1x1x8x128xf32>
    %101 = vector.shape_cast %100 : vector<1x1x8x128xf32> to vector<8x128xf32>
    %102 = vector.shape_cast %99 : vector<16x128xf32> to vector<2x8x128xf32>
    %cst_77 = arith.constant dense<0.000000e+00> : vector<8x128xf32>
    %103 = vector.multi_reduction <add>, %102, %cst_77 [0] : vector<2x8x128xf32> to vector<8x128xf32>
    %104 = arith.addf %101, %103 : vector<8x128xf32>
    %c0_78 = arith.constant 0 : index
    %c2_79 = arith.constant 2 : index
    %c0_80 = arith.constant 0 : index
    %c0_81 = arith.constant 0 : index
    %105 = vector.load %arg7[%c0_78, %c2_79, %c0_80, %c0_81] : memref<1x13x8x128xf32, #tpu.memory_space<vmem>>, vector<1x1x8x128xf32>
    %106 = vector.shape_cast %105 : vector<1x1x8x128xf32> to vector<8x128xf32>
    %107 = vector.shape_cast %104 : vector<8x128xf32> to vector<1x1x8x128xf32>
    tpu.vector_store %arg7[%c0_78, %c2_79, %c0_80, %c0_81], %107 {strides = array<i32>} : memref<1x13x8x128xf32, #tpu.memory_space<vmem>>, vector<1x1x8x128xf32>,
    %c0_82 = arith.constant 0 : index
    %c6 = arith.constant 6 : index
    %c0_83 = arith.constant 0 : index
    %c0_84 = arith.constant 0 : index
    %108 = vector.load %arg7[%c0_82, %c6, %c0_83, %c0_84] : memref<1x13x8x128xf32, #tpu.memory_space<vmem>>, vector<1x1x8x128xf32>
    %109 = vector.shape_cast %108 : vector<1x1x8x128xf32> to vector<8x128xf32>
    %110 = arith.mulf %88, %3 : vector<16x128xf32>
    %111 = vector.shape_cast %110 : vector<16x128xf32> to vector<2x8x128xf32>
    %cst_85 = arith.constant dense<0.000000e+00> : vector<8x128xf32>
    %112 = vector.multi_reduction <add>, %111, %cst_85 [0] : vector<2x8x128xf32> to vector<8x128xf32>
    %113 = arith.addf %109, %112 : vector<8x128xf32>
    %c0_86 = arith.constant 0 : index
    %c6_87 = arith.constant 6 : index
    %c0_88 = arith.constant 0 : index
    %c0_89 = arith.constant 0 : index
    %114 = vector.load %arg7[%c0_86, %c6_87, %c0_88, %c0_89] : memref<1x13x8x128xf32, #tpu.memory_space<vmem>>, vector<1x1x8x128xf32>
    %115 = vector.shape_cast %114 : vector<1x1x8x128xf32> to vector<8x128xf32>
    %116 = vector.shape_cast %113 : vector<8x128xf32> to vector<1x1x8x128xf32>
    tpu.vector_store %arg7[%c0_86, %c6_87, %c0_88, %c0_89], %116 {strides = array<i32>} : memref<1x13x8x128xf32, #tpu.memory_space<vmem>>, vector<1x1x8x128xf32>,
    %c0_90 = arith.constant 0 : index
    %c10 = arith.constant 10 : index
    %c0_91 = arith.constant 0 : index
    %c0_92 = arith.constant 0 : index
    %117 = vector.load %arg7[%c0_90, %c10, %c0_91, %c0_92] : memref<1x13x8x128xf32, #tpu.memory_space<vmem>>, vector<1x1x8x128xf32>
    %118 = vector.shape_cast %117 : vector<1x1x8x128xf32> to vector<8x128xf32>
    %119 = vector.shape_cast %88 : vector<16x128xf32> to vector<2x8x128xf32>
    %cst_93 = arith.constant dense<0.000000e+00> : vector<8x128xf32>
    %120 = vector.multi_reduction <add>, %119, %cst_93 [0] : vector<2x8x128xf32> to vector<8x128xf32>
    %121 = arith.addf %118, %120 : vector<8x128xf32>
    %c0_94 = arith.constant 0 : index
    %c10_95 = arith.constant 10 : index
    %c0_96 = arith.constant 0 : index
    %c0_97 = arith.constant 0 : index
    %122 = vector.load %arg7[%c0_94, %c10_95, %c0_96, %c0_97] : memref<1x13x8x128xf32, #tpu.memory_space<vmem>>, vector<1x1x8x128xf32>
    %123 = vector.shape_cast %122 : vector<1x1x8x128xf32> to vector<8x128xf32>
    %124 = vector.shape_cast %121 : vector<8x128xf32> to vector<1x1x8x128xf32>
    tpu.vector_store %arg7[%c0_94, %c10_95, %c0_96, %c0_97], %124 {strides = array<i32>} : memref<1x13x8x128xf32, #tpu.memory_space<vmem>>, vector<1x1x8x128xf32>,
    %c0_98 = arith.constant 0 : index
    %c0_99 = arith.constant 0 : index
    %125 = vector.load %arg5[%c0_98, %c0_99] : memref<16x128xf32, #tpu.memory_space<vmem>>, vector<16x128xf32>
    %126 = math.log %125 : vector<16x128xf32>
    %cst_100 = arith.constant -1.000000e+02 : f32
    %127 = vector.broadcast %cst_100 : f32 to vector<16x128xf32>
    %128 = arith.maximumf %126, %127 : vector<16x128xf32>
    %cst_101 = arith.constant 1.000000e+00 : f32
    %129 = vector.broadcast %cst_101 : f32 to vector<16x128xf32>
    %130 = arith.subf %129, %125 : vector<16x128xf32>
    %131 = math.log %130 : vector<16x128xf32>
    %cst_102 = arith.constant -1.000000e+02 : f32
    %132 = vector.broadcast %cst_102 : f32 to vector<16x128xf32>
    %133 = arith.maximumf %131, %132 : vector<16x128xf32>
    %134 = arith.mulf %3, %128 : vector<16x128xf32>
    %135 = arith.mulf %5, %133 : vector<16x128xf32>
    %136 = arith.addf %134, %135 : vector<16x128xf32>
    %c0_103 = arith.constant 0 : index
    %c3 = arith.constant 3 : index
    %c0_104 = arith.constant 0 : index
    %c0_105 = arith.constant 0 : index
    %137 = vector.load %arg7[%c0_103, %c3, %c0_104, %c0_105] : memref<1x13x8x128xf32, #tpu.memory_space<vmem>>, vector<1x1x8x128xf32>
    %138 = vector.shape_cast %137 : vector<1x1x8x128xf32> to vector<8x128xf32>
    %139 = vector.shape_cast %136 : vector<16x128xf32> to vector<2x8x128xf32>
    %cst_106 = arith.constant dense<0.000000e+00> : vector<8x128xf32>
    %140 = vector.multi_reduction <add>, %139, %cst_106 [0] : vector<2x8x128xf32> to vector<8x128xf32>
    %141 = arith.addf %138, %140 : vector<8x128xf32>
    %c0_107 = arith.constant 0 : index
    %c3_108 = arith.constant 3 : index
    %c0_109 = arith.constant 0 : index
    %c0_110 = arith.constant 0 : index
    %142 = vector.load %arg7[%c0_107, %c3_108, %c0_109, %c0_110] : memref<1x13x8x128xf32, #tpu.memory_space<vmem>>, vector<1x1x8x128xf32>
    %143 = vector.shape_cast %142 : vector<1x1x8x128xf32> to vector<8x128xf32>
    %144 = vector.shape_cast %141 : vector<8x128xf32> to vector<1x1x8x128xf32>
    tpu.vector_store %arg7[%c0_107, %c3_108, %c0_109, %c0_110], %144 {strides = array<i32>} : memref<1x13x8x128xf32, #tpu.memory_space<vmem>>, vector<1x1x8x128xf32>,
    %c0_111 = arith.constant 0 : index
    %c7 = arith.constant 7 : index
    %c0_112 = arith.constant 0 : index
    %c0_113 = arith.constant 0 : index
    %145 = vector.load %arg7[%c0_111, %c7, %c0_112, %c0_113] : memref<1x13x8x128xf32, #tpu.memory_space<vmem>>, vector<1x1x8x128xf32>
    %146 = vector.shape_cast %145 : vector<1x1x8x128xf32> to vector<8x128xf32>
    %147 = arith.mulf %125, %3 : vector<16x128xf32>
    %148 = vector.shape_cast %147 : vector<16x128xf32> to vector<2x8x128xf32>
    %cst_114 = arith.constant dense<0.000000e+00> : vector<8x128xf32>
    %149 = vector.multi_reduction <add>, %148, %cst_114 [0] : vector<2x8x128xf32> to vector<8x128xf32>
    %150 = arith.addf %146, %149 : vector<8x128xf32>
    %c0_115 = arith.constant 0 : index
    %c7_116 = arith.constant 7 : index
    %c0_117 = arith.constant 0 : index
    %c0_118 = arith.constant 0 : index
    %151 = vector.load %arg7[%c0_115, %c7_116, %c0_117, %c0_118] : memref<1x13x8x128xf32, #tpu.memory_space<vmem>>, vector<1x1x8x128xf32>
    %152 = vector.shape_cast %151 : vector<1x1x8x128xf32> to vector<8x128xf32>
    %153 = vector.shape_cast %150 : vector<8x128xf32> to vector<1x1x8x128xf32>
    tpu.vector_store %arg7[%c0_115, %c7_116, %c0_117, %c0_118], %153 {strides = array<i32>} : memref<1x13x8x128xf32, #tpu.memory_space<vmem>>, vector<1x1x8x128xf32>,
    %c0_119 = arith.constant 0 : index
    %c11 = arith.constant 11 : index
    %c0_120 = arith.constant 0 : index
    %c0_121 = arith.constant 0 : index
    %154 = vector.load %arg7[%c0_119, %c11, %c0_120, %c0_121] : memref<1x13x8x128xf32, #tpu.memory_space<vmem>>, vector<1x1x8x128xf32>
    %155 = vector.shape_cast %154 : vector<1x1x8x128xf32> to vector<8x128xf32>
    %156 = vector.shape_cast %125 : vector<16x128xf32> to vector<2x8x128xf32>
    %cst_122 = arith.constant dense<0.000000e+00> : vector<8x128xf32>
    %157 = vector.multi_reduction <add>, %156, %cst_122 [0] : vector<2x8x128xf32> to vector<8x128xf32>
    %158 = arith.addf %155, %157 : vector<8x128xf32>
    %c0_123 = arith.constant 0 : index
    %c11_124 = arith.constant 11 : index
    %c0_125 = arith.constant 0 : index
    %c0_126 = arith.constant 0 : index
    %159 = vector.load %arg7[%c0_123, %c11_124, %c0_125, %c0_126] : memref<1x13x8x128xf32, #tpu.memory_space<vmem>>, vector<1x1x8x128xf32>
    %160 = vector.shape_cast %159 : vector<1x1x8x128xf32> to vector<8x128xf32>
    %161 = vector.shape_cast %158 : vector<8x128xf32> to vector<1x1x8x128xf32>
    tpu.vector_store %arg7[%c0_123, %c11_124, %c0_125, %c0_126], %161 {strides = array<i32>} : memref<1x13x8x128xf32, #tpu.memory_space<vmem>>, vector<1x1x8x128xf32>,
    return
  }
  func.func @transform_0(%arg0: i32, %arg1: i32) -> (i32, i32) {
    %c1_i32 = arith.constant 1 : i32
    %0 = arith.muli %arg0, %c1_i32 : i32
    %1 = arith.addi %0, %arg1 : i32
    %c0_i32 = arith.constant 0 : i32
    %c0_i32_0 = arith.constant 0 : i32
    return %1, %c0_i32 : i32, i32
  }
  func.func @transform_1(%arg0: i32, %arg1: i32) -> (i32, i32) {
    %c1_i32 = arith.constant 1 : i32
    %0 = arith.muli %arg0, %c1_i32 : i32
    %1 = arith.addi %0, %arg1 : i32
    %c0_i32 = arith.constant 0 : i32
    %c0_i32_0 = arith.constant 0 : i32
    return %1, %c0_i32 : i32, i32
  }
  func.func @transform_2(%arg0: i32, %arg1: i32) -> (i32, i32) {
    %c1_i32 = arith.constant 1 : i32
    %0 = arith.muli %arg0, %c1_i32 : i32
    %1 = arith.addi %0, %arg1 : i32
    %c0_i32 = arith.constant 0 : i32
    %c0_i32_0 = arith.constant 0 : i32
    return %1, %c0_i32 : i32, i32
  }
  func.func @transform_3(%arg0: i32, %arg1: i32) -> (i32, i32) {
    %c1_i32 = arith.constant 1 : i32
    %0 = arith.muli %arg0, %c1_i32 : i32
    %1 = arith.addi %0, %arg1 : i32
    %c0_i32 = arith.constant 0 : i32
    %c0_i32_0 = arith.constant 0 : i32
    return %1, %c0_i32 : i32, i32
  }
  func.func @transform_4(%arg0: i32, %arg1: i32) -> (i32, i32) {
    %c1_i32 = arith.constant 1 : i32
    %0 = arith.muli %arg0, %c1_i32 : i32
    %1 = arith.addi %0, %arg1 : i32
    %c0_i32 = arith.constant 0 : i32
    %c0_i32_0 = arith.constant 0 : i32
    return %1, %c0_i32 : i32, i32
  }
  func.func @transform_5(%arg0: i32, %arg1: i32) -> (i32, i32, i32, i32) {
    %c0_i32 = arith.constant 0 : i32
    %c0_i32_0 = arith.constant 0 : i32
    %c0_i32_1 = arith.constant 0 : i32
    %c0_i32_2 = arith.constant 0 : i32
    return %arg0, %c0_i32, %c0_i32_0, %c0_i32_1 : i32, i32, i32, i32
  }
}

</mosaic_0001>

<bundles_post_ra>
// kernel: tpu_custom_call.1
= control target key start
LH: loop header
LB: loop body
LE: loop exit
PB: predicated region body
PF: predicated region fallthrough
CT: control target
= control target key end

     0   :  { %10 = vsyncpa [#allocation3], 0  ;;  %s598_s0 = inlined_call_operand.hbm [shape: f32[16,128], index: 0, kind: input, shape index: {}]   ;;  %s599_s1 = inlined_call_operand.hbm [shape: f32[16,128], index: 1, kind: input, shape index: {}]   ;;  %s600_s2 = inlined_call_operand.hbm [shape: f32[16,128], index: 2, kind: input, shape index: {}]   ;;  %s601_s3 = inlined_call_operand.hbm [shape: f32[16,128], index: 3, kind: input, shape index: {}]   ;;  %s602_s4 = inlined_call_operand.hbm [shape: f32[16,128], index: 4, kind: input, shape index: {}]   ;;  %s603_s5 = inlined_call_operand.hbm [shape: f32[1,13,8,128], index: 5, kind: output, shape index: {}]  }
   0x1   :  { %11 = vsyncpa [#allocation6], 0 }
   0x2   :  { %12 = vsyncpa [#allocation9], 0 }
   0x3   :  { %13 = vsyncpa [#allocation4], 0  ;;  %s488_s18 = smov [#allocation5]   ;;  %s489_s20 = smov [#allocation8]  }
   0x4   :  { %s39_s19 = sshll.u32 %s488_s18, 4  ;;  %s71_s21 = sshll.u32 %s489_s20, 4  ;;  %s40_s19 = int_to_ptr.vmem [resolvable:$true] %s39_s19  ;;  %s72_s21 = int_to_ptr.vmem [resolvable:$true] %s71_s21 }
   0x5   :  { %s368_s22 = scalar_lea.vmem %s40_s19, 256  ;;  %p373_p1 = scmp.lt.s32.totalorder %s40_s19, %s40_s19 }
   0x6   :  { %p369_p0 = scmp.ne.s32.totalorder %s40_s19, %s368_s22  ;;  %p374_p2 = scmp.lt.s32.totalorder %s368_s22, %s368_s22 }
   0x8   :  { %p375_p3 = por %p374_p2, %p373_p1 }
   0xa   :  { %p376_p4 = pnand %p375_p3, %p369_p0 }
   0xc   :  { %379 = shalt.err (!%p376_p4)
}
   0xd   :  { %s490_s23 = smov 128   ;;  %s491_s24 = smov 8  }
   0xe   :  { %45 = dma.hbm_to_vmem [thread:$0]  %s599_s1, 256, %s40_s19, [#allocation6], %s490_s23, %s490_s23, %s491_s24  }
   0xf   :  { %s388_s27 = scalar_lea.vmem %s72_s21, 256  ;;  %p393_p6 = scmp.lt.s32.totalorder %s72_s21, %s72_s21 }
  0x10   :  { %p389_p5 = scmp.ne.s32.totalorder %s72_s21, %s388_s27  ;;  %p394_p7 = scmp.lt.s32.totalorder %s388_s27, %s388_s27 }
  0x12   :  { %p395_p8 = por %p394_p7, %p393_p6 }
  0x14   :  { %p396_p9 = pnand %p395_p8, %p389_p5 }
  0x16   :  { %399 = shalt.err (!%p396_p9)
}
  0x17   :  { %77 = dma.hbm_to_vmem [thread:$0]  %s601_s3, 256, %s72_s21, [#allocation9], %s490_s23, %s490_s23, %s491_s24  }
  0x18   :  { %s492_s30 = smov [#allocation2]   ;;  %s493_s7 = smov [#allocation7]  }
  0x19   :  { %s23_s6 = sshll.u32 %s492_s30, 4  ;;  %s55_s8 = sshll.u32 %s493_s7, 4  ;;  %s24_s6 = int_to_ptr.vmem [resolvable:$true] %s23_s6  ;;  %s56_s8 = int_to_ptr.vmem [resolvable:$true] %s55_s8 }
  0x1a   :  { %s408_s1 = scalar_lea.vmem %s24_s6, 256  ;;  %p413_p11 = scmp.lt.s32.totalorder %s24_s6, %s24_s6 }
  0x1b   :  { %p409_p10 = scmp.ne.s32.totalorder %s24_s6, %s408_s1  ;;  %p414_p12 = scmp.lt.s32.totalorder %s408_s1, %s408_s1 }
  0x1d   :  { %p415_p13 = por %p414_p12, %p413_p11 }
  0x1f   :  { %p416_p0 = pnand %p415_p13, %p409_p10 }
  0x21   :  { %419 = shalt.err (!%p416_p0)
}
  0x22   :  { %29 = dma.hbm_to_vmem [thread:$0]  %s598_s0, 256, %s24_s6, [#allocation3], %s490_s23, %s490_s23, %s491_s24  }
  0x23   :  { %s428_s3 = scalar_lea.vmem %s56_s8, 256  ;;  %p433_p2 = scmp.lt.s32.totalorder %s56_s8, %s56_s8 }
  0x24   :  { %p429_p1 = scmp.ne.s32.totalorder %s56_s8, %s428_s3  ;;  %p434_p3 = scmp.lt.s32.totalorder %s428_s3, %s428_s3 }
  0x26   :  { %p435_p4 = por %p434_p3, %p433_p2 }
  0x28   :  { %p436_p5 = pnand %p435_p4, %p429_p1 }
  0x2a   :  { %439 = shalt.err (!%p436_p5)
}
  0x2b   :  { %61 = dma.hbm_to_vmem [thread:$0]  %s600_s2, 256, %s56_s8, [#allocation6], %s490_s23, %s490_s23, %s491_s24  }
  0x2c   :  { %s494_s13 = smov [#allocation10]  }
  0x2d   :  { %s87_s14 = sshll.u32 %s494_s13, 4  ;;  %s88_s14 = int_to_ptr.vmem [resolvable:$true] %s87_s14 }
  0x2e   :  { %s448_s15 = scalar_lea.vmem %s88_s14, 256  ;;  %p453_p7 = scmp.lt.s32.totalorder %s88_s14, %s88_s14 }
  0x2f   :  { %p449_p6 = scmp.ne.s32.totalorder %s88_s14, %s448_s15  ;;  %p454_p8 = scmp.lt.s32.totalorder %s448_s15, %s448_s15 }
  0x31   :  { %p455_p9 = por %p454_p8, %p453_p7 }
  0x33   :  { %p456_p10 = pnand %p455_p9, %p449_p6 }
  0x35   :  { %459 = shalt.err (!%p456_p10)
}
  0x36   :  { %93 = dma.hbm_to_vmem [thread:$0]  %s602_s4, 256, %s88_s14, [#allocation9], %s490_s23, %s490_s23, %s491_s24  }
  0x37   :  { %480 = dma.done.wait [#allocation3], 256  }
  0x38   :  { %481 = vsyncadd [#allocation3], 4294967040 }
  0x39   :  { %482 = dma.done.wait [#allocation6], 512  }
  0x3a   :  { %483 = vsyncadd [#allocation6], 4294966784 }
  0x3b   :  { %484 = dma.done.wait [#allocation9], 512  }
  0x3c   :  { %485 = vsyncadd [#allocation9], 4294966784  ;;  %v556_v0 = vld [vmem:[#allocation10] sm:$0xff]  ;;  %v558_v1 = vld [vmem:[#allocation10 + $0x8] sm:$0xff]  ;;  %s495_s2 = smov [#allocation11]  }
  0x3d   :  { %v145_v2 = vld [vmem:[#allocation2] sm:$0xff]  ;;  %v142_v3 = vadd.f32 %v558_v1, %v556_v0  ;;  %v146_v4 = vld [vmem:[#allocation2 + $0x8] sm:$0xff]  ;;  %v183_v5 = vld [vmem:[#allocation5] sm:$0xff]  ;;  %v571_v44 = vsub.f32 1.0, %v556_v0  ;;  %v574_v48 = vsub.f32 1.0, %v558_v1  ;;  %s305_s4 = sshll.u32 %s495_s2, 4  ;;  %s306_s4 = int_to_ptr.vmem [resolvable:$true] %s305_s4 }
  0x3e   :  { %328 = vlog2.f32 %v145_v2  ;;  %v184_v6 = vld [vmem:[#allocation5 + $0x8] sm:$0xff]  ;;  %v153_v7 = vsub.f32 1.0, %v145_v2  ;;  %v154_v8 = vsub.f32 1.0, %v146_v4  ;;  %v173_v9 = vmul.f32 %v145_v2, %v556_v0  ;;  %v222_v12 = vld [vmem:[#allocation7] sm:$0xff]  ;;  %v223_v13 = vld [vmem:[#allocation7 + $0x8] sm:$0xff]  ;;  %s460_s17 = scalar_lea.vmem %s306_s4, 1664  ;;  %p465_p12 = scmp.lt.s32.totalorder %s306_s4, %s306_s4 }
  0x3f   :  { %330 = vlog2.f32 %v146_v4  ;;  %v174_v10 = vmul.f32 %v146_v4, %v558_v1  ;;  %v180_v11 = vadd.f32 %v146_v4, %v145_v2  ;;  %v191_v14 = vsub.f32 1.0, %v183_v5  ;;  %144 = vst [vmem:[#allocation11 + $0x60] sm:$0xff] %v142_v3  ;;  %v261_v26 = vld [vmem:[#allocation8] sm:$0xff]  ;;  %v262_v27 = vld [vmem:[#allocation8 + $0x8] sm:$0xff]  ;;  %p461_p11 = scmp.ne.s32.totalorder %s306_s4, %s460_s17  ;;  %p466_p13 = scmp.lt.s32.totalorder %s460_s17, %s460_s17 }
  0x40   :  { %332 = vlog2.f32 %v183_v5  ;;  %v192_v15 = vsub.f32 1.0, %v184_v6  ;;  %v212_v16 = vmul.f32 %v183_v5, %v556_v0  ;;  %v213_v18 = vmul.f32 %v184_v6, %v558_v1 }
  0x41   :  { %334 = vlog2.f32 %v153_v7  ;;  %v175_v17 = vadd.f32 %v174_v10, %v173_v9  ;;  %v219_v19 = vadd.f32 %v184_v6, %v183_v5  ;;  %v230_v20 = vsub.f32 1.0, %v222_v12  ;;  %182 = vst [vmem:[#allocation11 + $0x40] sm:$0xff] %v180_v11  ;;  %p467_p0 = por %p466_p13, %p465_p12 }
  0x42   :  { %336 = vlog2.f32 %v154_v8  ;;  %v231_v21 = vsub.f32 1.0, %v223_v13  ;;  %v214_v22 = vadd.f32 %v213_v18, %v212_v16  ;;  %v251_v23 = vmul.f32 %v222_v12, %v556_v0 }
  0x43   :  { %338 = vlog2.f32 %v184_v6  ;;  %v252_v24 = vmul.f32 %v223_v13, %v558_v1  ;;  %v258_v25 = vadd.f32 %v223_v13, %v222_v12  ;;  %177 = vst [vmem:[#allocation11 + $0x20] sm:$0xff] %v175_v17  ;;  %221 = vst [vmem:[#allocation11 + $0x48] sm:$0xff] %v219_v19  ;;  %v290_v29 = vmul.f32 %v261_v26, %v556_v0  ;;  %p468_p1 = pnand %p467_p0, %p461_p11 }
  0x44   :  { %340 = vlog2.f32 %v191_v14  ;;  %216 = vst [vmem:[#allocation11 + $0x28] sm:$0xff] %v214_v22  ;;  %v269_v30 = vsub.f32 1.0, %v261_v26  ;;  %v291_v31 = vmul.f32 %v262_v27, %v558_v1  ;;  %v297_v32 = vadd.f32 %v262_v27, %v261_v26 }
  0x45   :  { %342 = vlog2.f32 %v192_v15  ;;  %v253_v28 = vadd.f32 %v252_v24, %v251_v23  ;;  %260 = vst [vmem:[#allocation11 + $0x50] sm:$0xff] %v258_v25  ;;  %v270_v33 = vsub.f32 1.0, %v262_v27 }
  0x46   :  { %344 = vlog2.f32 %v222_v12  ;;  %v292_v34 = vadd.f32 %v291_v31, %v290_v29  ;;  %299 = vst [vmem:[#allocation11 + $0x58] sm:$0xff] %v297_v32 }
  0x47   :  { %346 = vlog2.f32 %v223_v13  ;;  %255 = vst [vmem:[#allocation11 + $0x30] sm:$0xff] %v253_v28 }
  0x48   :  { %348 = vlog2.f32 %v230_v20  ;;  %294 = vst [vmem:[#allocation11 + $0x38] sm:$0xff] %v292_v34 }
  0x49   :  { %350 = vlog2.f32 %v231_v21 }
  0x4a   :  { %352 = vlog2.f32 %v261_v26 }
  0x4b   :  { %v329_v35 = vpop.eup %328  ;;  %354 = vlog2.f32 %v262_v27 }
  0x4c   :  { %v331_v36 = vpop.eup %330  ;;  %v148_v37 = vmul.f32 0.6931472, %v329_v35  ;;  %356 = vlog2.f32 %v269_v30 }
  0x4d   :  { %v333_v38 = vpop.eup %332  ;;  %v150_v39 = vmul.f32 0.6931472, %v331_v36  ;;  %358 = vlog2.f32 %v270_v33 }
  0x4e   :  { %v335_v40 = vpop.eup %334  ;;  %v151_v41 = vmax.f32 %v148_v37, -100.0  ;;  %v186_v42 = vmul.f32 0.6931472, %v333_v38 }
  0x4f   :  { %v337_v43 = vpop.eup %336  ;;  %v152_v45 = vmax.f32 %v150_v39, -100.0  ;;  %v156_v46 = vmul.f32 0.6931472, %v335_v40 }
  0x50   :  { %v339_v47 = vpop.eup %338  ;;  %v158_v49 = vmul.f32 0.6931472, %v337_v43  ;;  %v189_v50 = vmax.f32 %v186_v42, -100.0  ;;  %v161_v53 = vmul.f32 %v151_v41, %v556_v0 }
  0x51   :  { %v341_v51 = vpop.eup %340  ;;  %v159_v52 = vmax.f32 %v156_v46, -100.0  ;;  %v188_v54 = vmul.f32 0.6931472, %v339_v47  ;;  %v162_v57 = vmul.f32 %v152_v45, %v558_v1 }
  0x52   :  { %v343_v55 = vpop.eup %342  ;;  %v160_v56 = vmax.f32 %v158_v49, -100.0  ;;  %v194_v58 = vmul.f32 0.6931472, %v341_v51  ;;  %v199_v4 = vmul.f32 %v189_v50, %v556_v0 }
  0x53   :  { %v345_v59 = vpop.eup %344  ;;  %v163_v60 = vmul.f32 %v159_v52, %v571_v44  ;;  %v190_v61 = vmax.f32 %v188_v54, -100.0  ;;  %v196_v62 = vmul.f32 0.6931472, %v343_v55 }
  0x54   :  { %v347_v63 = vpop.eup %346  ;;  %v164_v2 = vmul.f32 %v160_v56, %v574_v48  ;;  %v197_v3 = vmax.f32 %v194_v58, -100.0  ;;  %v225_v5 = vmul.f32 0.6931472, %v345_v59 }
  0x55   :  { %v349_v6 = vpop.eup %348  ;;  %v165_v7 = vadd.f32 %v163_v60, %v161_v53  ;;  %v198_v8 = vmax.f32 %v196_v62, -100.0  ;;  %v200_v9 = vmul.f32 %v190_v61, %v558_v1  ;;  %v227_v10 = vmul.f32 0.6931472, %v347_v63 }
  0x56   :  { %v351_v11 = vpop.eup %350  ;;  %v166_v12 = vadd.f32 %v164_v2, %v162_v57  ;;  %v201_v13 = vmul.f32 %v197_v3, %v571_v44  ;;  %v228_v14 = vmax.f32 %v225_v5, -100.0  ;;  %v233_v15 = vmul.f32 0.6931472, %v349_v6 }
  0x57   :  { %v353_v16 = vpop.eup %352  ;;  %v202_v17 = vmul.f32 %v198_v8, %v574_v48  ;;  %v229_v18 = vmax.f32 %v227_v10, -100.0  ;;  %v235_v19 = vmul.f32 0.6931472, %v351_v11 }
  0x58   :  { %v355_v20 = vpop.eup %354  ;;  %v168_v21 = vadd.f32 %v166_v12, %v165_v7  ;;  %v203_v22 = vadd.f32 %v201_v13, %v199_v4  ;;  %v236_v23 = vmax.f32 %v233_v15, -100.0  ;;  %v238_v24 = vmul.f32 %v228_v14, %v556_v0 }
  0x59   :  { %v357_v25 = vpop.eup %356  ;;  %v204_v26 = vadd.f32 %v202_v17, %v200_v9  ;;  %v237_v27 = vmax.f32 %v235_v19, -100.0  ;;  %v239_v28 = vmul.f32 %v229_v18, %v558_v1  ;;  %v264_v29 = vmul.f32 0.6931472, %v353_v16 }
  0x5a   :  { %v359_v30 = vpop.eup %358  ;;  %v240_v31 = vmul.f32 %v236_v23, %v571_v44  ;;  %v266_v32 = vmul.f32 0.6931472, %v355_v20  ;;  %v272_v33 = vmul.f32 0.6931472, %v357_v25  ;;  %170 = vst [vmem:[#allocation11] sm:$0xff] %v168_v21 }
  0x5b   :  { %v207_v34 = vadd.f32 %v204_v26, %v203_v22  ;;  %v241_v35 = vmul.f32 %v237_v27, %v574_v48  ;;  %v267_v36 = vmax.f32 %v264_v29, -100.0  ;;  %v274_v37 = vmul.f32 0.6931472, %v359_v30 }
  0x5c   :  { %v242_v38 = vadd.f32 %v240_v31, %v238_v24  ;;  %v268_v39 = vmax.f32 %v266_v32, -100.0  ;;  %v275_v40 = vmax.f32 %v272_v33, -100.0 }
  0x5d   :  { %v243_v41 = vadd.f32 %v241_v35, %v239_v28  ;;  %v276_v42 = vmax.f32 %v274_v37, -100.0  ;;  %v277_v43 = vmul.f32 %v267_v36, %v556_v0  ;;  %209 = vst [vmem:[#allocation11 + $0x8] sm:$0xff] %v207_v34 }
  0x5e   :  { %v278_v45 = vmul.f32 %v268_v39, %v558_v1  ;;  %v279_v46 = vmul.f32 %v275_v40, %v571_v44 }
  0x5f   :  { %v246_v47 = vadd.f32 %v243_v41, %v242_v38  ;;  %v280_v49 = vmul.f32 %v276_v42, %v574_v48 }
  0x60   :  { %v281_v50 = vadd.f32 %v279_v46, %v277_v43 }
  0x61   :  { %v282_v51 = vadd.f32 %v280_v49, %v278_v45  ;;  %248 = vst [vmem:[#allocation11 + $0x10] sm:$0xff] %v246_v47 }
  0x63   :  { %v285_v52 = vadd.f32 %v282_v51, %v281_v50 }
  0x65   :  { %287 = vst [vmem:[#allocation11 + $0x18] sm:$0xff] %v285_v52 }
  0x66   :  { %471 = shalt.err (!%p468_p1)
}
  0x67   :  { %311 = dma.vmem_to_hbm [thread:$0]  %s306_s4, 1664, %s603_s5, [#allocation4], %s490_s23, %s490_s23, %s491_s24  }
  0x68   :  { %486 = dma.done.wait [#allocation4], 1664  }
  0x69   :  { %487 = vsyncadd [#allocation4], 4294965632 }
  0x6a   :  { %315 = vsyncpa [#allocation3], 1 }
  0x6b   :  { %316 = vsyncpa [#allocation6], 1 }
  0x6c   :  { %317 = vsyncpa [#allocation9], 1 }
  0x6d   :  { %318 = vsyncpa [#allocation4], 1 }

</bundles_post_ra>
